<compile_context>
chip_gen: v7x
topology: tpu7x:2x2x1
jax: 0.10.0
libtpu: 0.0.40
codegen_flags: <defaults>
</compile_context>

<pallas_src>
import jax
import jax.numpy as jnp
from jax.experimental import pallas as pl
from jax.experimental.pallas import tpu as pltpu

LANE = 128  # lane width; feature dims padded to multiples of this


def _round_up(x, m):
    return (x + m - 1) // m * m


def mlp_kernel(x_ref, w1_ref, b1_ref, w2_ref, b2_ref, w3_ref, b3_ref, o_ref):
    # Fused 3-matmul chain on one batch tile: bf16 MXU inputs, f32 accumulation,
    # intermediates never leave VMEM/vregs.
    x = x_ref[...]
    h1 = jnp.dot(x, w1_ref[...], preferred_element_type=jnp.float32) + b1_ref[...]
    h2 = jnp.dot(h1.astype(w2_ref.dtype), w2_ref[...],
                 preferred_element_type=jnp.float32) + b2_ref[...]
    out = jnp.dot(h2.astype(w3_ref.dtype), w3_ref[...],
                  preferred_element_type=jnp.float32) + b3_ref[...]
    o_ref[...] = out.astype(o_ref.dtype)


def prepare_params(params, *, compute_dtype=jnp.bfloat16):
    """One-time prep: transpose (out,in)->(in,out), zero-pad every feature dim
    to a multiple of 128 lanes, cast weights to bf16 (biases stay f32)."""
    def pad_w(w_t):
        k, n = w_t.shape
        kp, np_ = _round_up(k, LANE), _round_up(n, LANE)
        return jnp.pad(w_t, ((0, kp - k), (0, np_ - n))).astype(compute_dtype)

    def pad_b(b):
        n = b.shape[0]
        return jnp.pad(b, (0, _round_up(n, LANE) - n)).astype(jnp.float32)[None, :]

    return {
        "w1": pad_w(params["w1"].T), "b1": pad_b(params["b1"]),
        "w2": pad_w(params["w2"].T), "b2": pad_b(params["b2"]),
        "w3": pad_w(params["w3"].T), "b3": pad_b(params["b3"]),
        "in_dim": int(params["w1"].shape[1]),     # real (unpadded) dims
        "out_dim": int(params["w3"].shape[0]),
    }


def _pick_tb(bp):
    # Prefer a large MXU-friendly tile AND >=2 grid steps (v7x: 2 TensorCores);
    # for small batches fall back to a single full-batch step (zero per-step
    # pipeline overhead dominates at tiny B).
    for cand in (512, 256, 128):
        if bp % cand == 0 and bp // cand >= 2:
            return cand
    return bp


def simple_net_forward(x, pp, *, compute_dtype=jnp.bfloat16):
    """x: (B, in_dim) float32. pp: output of prepare_params."""
    B, in_dim = x.shape
    assert in_dim == pp["in_dim"]
    in_p, h1_p = pp["w1"].shape
    h2_p = pp["w2"].shape[1]
    out_p = pp["w3"].shape[1]
    out_dim = pp["out_dim"]

    bp = _round_up(B, 8)                                   # sublane-align batch
    xp = jnp.pad(x, ((0, bp - B), (0, in_p - in_dim))).astype(compute_dtype)

    tb = _pick_tb(bp)
    grid = (bp // tb,)

    # Explicit VMEM budget (double-buffered x/out tiles + resident weights),
    # capped well under v7x's 64 MiB physical VMEM.
    block_bytes = (
        2 * tb * in_p * 2                                   # x tile, bf16, 2 bufs
        + 2 * tb * out_p * 4                                # out tile, f32, 2 bufs
        + 2 * (in_p * h1_p + h1_p * h2_p + h2_p * out_p) * 2   # weights, bf16
        + 2 * (h1_p + h2_p + out_p) * 4                     # biases, f32
    )
    vmem_limit = int(min(max(2 * block_bytes, 8 << 20), 48 << 20))

    # NOTE: weight/bias specs are grid-invariant; pipeline_mode=pl.Buffered(1)
    # would halve their VMEM at large hidden dims (left at default here since
    # the demo grid has a single step and weights are tiny).
    in_specs = [
        pl.BlockSpec((tb, in_p), lambda i: (i, 0)),         # x tile
        pl.BlockSpec((in_p, h1_p), lambda i: (0, 0)),       # W1^T (padded, bf16)
        pl.BlockSpec((1, h1_p), lambda i: (0, 0)),          # b1
        pl.BlockSpec((h1_p, h2_p), lambda i: (0, 0)),       # W2^T
        pl.BlockSpec((1, h2_p), lambda i: (0, 0)),          # b2
        pl.BlockSpec((h2_p, out_p), lambda i: (0, 0)),      # W3^T
        pl.BlockSpec((1, out_p), lambda i: (0, 0)),         # b3
    ]
    out_specs = pl.BlockSpec((tb, out_p), lambda i: (i, 0))  # lane-dense (128-mult)

    out_padded = pl.pallas_call(
        mlp_kernel,
        out_shape=jax.ShapeDtypeStruct((bp, out_p), jnp.float32),
        grid=grid,
        in_specs=in_specs,
        out_specs=out_specs,
        compiler_params=pltpu.CompilerParams(
            dimension_semantics=("parallel",),
            vmem_limit_bytes=vmem_limit,
        ),
    )(xp, pp["w1"], pp["b1"], pp["w2"], pp["b2"], pp["w3"], pp["b3"])

    return out_padded[:B, :out_dim]


def init_params(key, in_dim, n_hidden_1, n_hidden_2, out_dim):
    """Deterministic init mimicking PyTorch nn.Linear default (uniform +-1/sqrt(fan_in)),
    stored in PyTorch layout: W is (out_features, in_features)."""
    ks = jax.random.split(key, 6)

    def lin(kw, kb, fan_in, fan_out):
        bound = 1.0 / jnp.sqrt(fan_in)
        w = jax.random.uniform(kw, (fan_out, fan_in), jnp.float32, -bound, bound)
        b = jax.random.uniform(kb, (fan_out,), jnp.float32, -bound, bound)
        return w, b

    w1, b1 = lin(ks[0], ks[1], in_dim, n_hidden_1)
    w2, b2 = lin(ks[2], ks[3], n_hidden_1, n_hidden_2)
    w3, b3 = lin(ks[4], ks[5], n_hidden_2, out_dim)
    return {"w1": w1, "b1": b1, "w2": w2, "b2": b2, "w3": w3, "b3": b3}


if __name__ == "__main__":
    key = jax.random.PRNGKey(0)
    k_x, k_p = jax.random.split(key)

    # Small shapes consistent with the module: simpleNet(in_dim=32, 64, 48, 16).
    B, in_dim, n_h1, n_h2, out_dim = 16, 32, 64, 48, 16
    x = jax.random.normal(k_x, (B, in_dim), jnp.float32)
    params = init_params(k_p, in_dim, n_h1, n_h2, out_dim)

    pp = prepare_params(params)          # one-time transpose + pad + bf16 cast
    out = simple_net_forward(x, pp)
    out = jax.block_until_ready(out)

    # Pure-JAX f32 reference (same math as the PyTorch forward).
    ref = x @ params["w1"].T + params["b1"]
    ref = ref @ params["w2"].T + params["b2"]
    ref = ref @ params["w3"].T + params["b3"]

    assert out.shape == (B, out_dim)
    assert jnp.allclose(out, ref, atol=5e-2, rtol=5e-2), (
        "mismatch vs reference; max abs diff = "
        f"{float(jnp.max(jnp.abs(out - ref)))}")

    print("KERNEL_OK")
</pallas_src>

<mosaic_0001>
module attributes {stable_mosaic.version = 11 : i64} {
  func.func @mlp_kernel(%arg0: i32, %arg1: memref<16x128xbf16, #tpu.memory_space<vmem>>, %arg2: memref<128x128xbf16, #tpu.memory_space<vmem>>, %arg3: memref<1x128xf32, #tpu.memory_space<vmem>>, %arg4: memref<128x128xbf16, #tpu.memory_space<vmem>>, %arg5: memref<1x128xf32, #tpu.memory_space<vmem>>, %arg6: memref<128x128xbf16, #tpu.memory_space<vmem>>, %arg7: memref<1x128xf32, #tpu.memory_space<vmem>>, %arg8: memref<16x128xf32, #tpu.memory_space<vmem>>) attributes {dimension_semantics = [#tpu.dimension_semantics<parallel>], iteration_bounds = array<i64: 1>, scalar_prefetch = 0 : i64, scratch_operands = 0 : i64, tpu.core_type = #tpu.core_type<tc>, window_params = [{transform_indices = @transform_0, window_bounds = array<i64: 16, 128>}, {pipeline_mode = #tpu.pipeline_mode<synchronous>, transform_indices = @transform_1, window_bounds = array<i64: 128, 128>}, {pipeline_mode = #tpu.pipeline_mode<synchronous>, transform_indices = @transform_2, window_bounds = array<i64: 1, 128>}, {pipeline_mode = #tpu.pipeline_mode<synchronous>, transform_indices = @transform_3, window_bounds = array<i64: 128, 128>}, {pipeline_mode = #tpu.pipeline_mode<synchronous>, transform_indices = @transform_4, window_bounds = array<i64: 1, 128>}, {pipeline_mode = #tpu.pipeline_mode<synchronous>, transform_indices = @transform_5, window_bounds = array<i64: 128, 128>}, {pipeline_mode = #tpu.pipeline_mode<synchronous>, transform_indices = @transform_6, window_bounds = array<i64: 1, 128>}, {transform_indices = @transform_7, window_bounds = array<i64: 16, 128>}]} {
    %c0 = arith.constant 0 : index
    %c0_0 = arith.constant 0 : index
    %0 = vector.load %arg1[%c0, %c0_0] : memref<16x128xbf16, #tpu.memory_space<vmem>>, vector<16x128xbf16>
    %c0_1 = arith.constant 0 : index
    %c0_2 = arith.constant 0 : index
    %1 = vector.load %arg2[%c0_1, %c0_2] : memref<128x128xbf16, #tpu.memory_space<vmem>>, vector<128x128xbf16>
    %cst = arith.constant dense<0.000000e+00> : vector<16x128xf32>
    %2 = tpu.matmul %0, %1, %cst {dimension_numbers = #tpu.dot_dimension_numbers<[1], [0], [0], [1], [0, 0, 1, 1], [], []>} : vector<16x128xbf16>, vector<128x128xbf16>, vector<16x128xf32> -> vector<16x128xf32>
    %c0_3 = arith.constant 0 : index
    %c0_4 = arith.constant 0 : index
    %3 = vector.load %arg3[%c0_3, %c0_4] : memref<1x128xf32, #tpu.memory_space<vmem>>, vector<1x128xf32>
    %4 = vector.broadcast %3 : vector<1x128xf32> to vector<16x128xf32>
    %5 = arith.addf %2, %4 : vector<16x128xf32>
    %6 = arith.truncf %5 : vector<16x128xf32> to vector<16x128xbf16>
    %c0_5 = arith.constant 0 : index
    %c0_6 = arith.constant 0 : index
    %7 = vector.load %arg4[%c0_5, %c0_6] : memref<128x128xbf16, #tpu.memory_space<vmem>>, vector<128x128xbf16>
    %cst_7 = arith.constant dense<0.000000e+00> : vector<16x128xf32>
    %8 = tpu.matmul %6, %7, %cst_7 {dimension_numbers = #tpu.dot_dimension_numbers<[1], [0], [0], [1], [0, 0, 1, 1], [], []>} : vector<16x128xbf16>, vector<128x128xbf16>, vector<16x128xf32> -> vector<16x128xf32>
    %c0_8 = arith.constant 0 : index
    %c0_9 = arith.constant 0 : index
    %9 = vector.load %arg5[%c0_8, %c0_9] : memref<1x128xf32, #tpu.memory_space<vmem>>, vector<1x128xf32>
    %10 = vector.broadcast %9 : vector<1x128xf32> to vector<16x128xf32>
    %11 = arith.addf %8, %10 : vector<16x128xf32>
    %12 = arith.truncf %11 : vector<16x128xf32> to vector<16x128xbf16>
    %c0_10 = arith.constant 0 : index
    %c0_11 = arith.constant 0 : index
    %13 = vector.load %arg6[%c0_10, %c0_11] : memref<128x128xbf16, #tpu.memory_space<vmem>>, vector<128x128xbf16>
    %cst_12 = arith.constant dense<0.000000e+00> : vector<16x128xf32>
    %14 = tpu.matmul %12, %13, %cst_12 {dimension_numbers = #tpu.dot_dimension_numbers<[1], [0], [0], [1], [0, 0, 1, 1], [], []>} : vector<16x128xbf16>, vector<128x128xbf16>, vector<16x128xf32> -> vector<16x128xf32>
    %c0_13 = arith.constant 0 : index
    %c0_14 = arith.constant 0 : index
    %15 = vector.load %arg7[%c0_13, %c0_14] : memref<1x128xf32, #tpu.memory_space<vmem>>, vector<1x128xf32>
    %16 = vector.broadcast %15 : vector<1x128xf32> to vector<16x128xf32>
    %17 = arith.addf %14, %16 : vector<16x128xf32>
    %c0_15 = arith.constant 0 : index
    %c0_16 = arith.constant 0 : index
    %18 = vector.load %arg8[%c0_15, %c0_16] : memref<16x128xf32, #tpu.memory_space<vmem>>, vector<16x128xf32>
    tpu.vector_store %arg8[%c0_15, %c0_16], %17 {strides = array<i32>} : memref<16x128xf32, #tpu.memory_space<vmem>>, vector<16x128xf32>,
    return
  }
  func.func @transform_0(%arg0: i32) -> (i32, i32) {
    %c0_i32 = arith.constant 0 : i32
    %c0_i32_0 = arith.constant 0 : i32
    return %arg0, %c0_i32 : i32, i32
  }
  func.func @transform_1(%arg0: i32) -> (i32, i32) {
    %c0_i32 = arith.constant 0 : i32
    %c0_i32_0 = arith.constant 0 : i32
    %c0_i32_1 = arith.constant 0 : i32
    return %c0_i32, %c0_i32_0 : i32, i32
  }
  func.func @transform_2(%arg0: i32) -> (i32, i32) {
    %c0_i32 = arith.constant 0 : i32
    %c0_i32_0 = arith.constant 0 : i32
    %c0_i32_1 = arith.constant 0 : i32
    return %c0_i32, %c0_i32_0 : i32, i32
  }
  func.func @transform_3(%arg0: i32) -> (i32, i32) {
    %c0_i32 = arith.constant 0 : i32
    %c0_i32_0 = arith.constant 0 : i32
    %c0_i32_1 = arith.constant 0 : i32
    return %c0_i32, %c0_i32_0 : i32, i32
  }
  func.func @transform_4(%arg0: i32) -> (i32, i32) {
    %c0_i32 = arith.constant 0 : i32
    %c0_i32_0 = arith.constant 0 : i32
    %c0_i32_1 = arith.constant 0 : i32
    return %c0_i32, %c0_i32_0 : i32, i32
  }
  func.func @transform_5(%arg0: i32) -> (i32, i32) {
    %c0_i32 = arith.constant 0 : i32
    %c0_i32_0 = arith.constant 0 : i32
    %c0_i32_1 = arith.constant 0 : i32
    return %c0_i32, %c0_i32_0 : i32, i32
  }
  func.func @transform_6(%arg0: i32) -> (i32, i32) {
    %c0_i32 = arith.constant 0 : i32
    %c0_i32_0 = arith.constant 0 : i32
    %c0_i32_1 = arith.constant 0 : i32
    return %c0_i32, %c0_i32_0 : i32, i32
  }
  func.func @transform_7(%arg0: i32) -> (i32, i32) {
    %c0_i32 = arith.constant 0 : i32
    %c0_i32_0 = arith.constant 0 : i32
    return %arg0, %c0_i32 : i32, i32
  }
}

</mosaic_0001>

<bundles_post_ra>
// kernel: tpu_custom_call.1
= control target key start
LH: loop header
LB: loop body
LE: loop exit
PB: predicated region body
PF: predicated region fallthrough
CT: control target
= control target key end

     0   :  { %12 = vsyncpa [#allocation3], 0  ;;  %s895_s0 = inlined_call_operand.hbm [shape: bf16[16,128], index: 0, kind: input, shape index: {}]   ;;  %s896_s1 = inlined_call_operand.hbm [shape: bf16[128,128], index: 1, kind: input, shape index: {}]   ;;  %s897_s2 = inlined_call_operand.vmem [shape: f32[1,128], index: 2, kind: input, shape index: {}]   ;;  %s898_s3 = inlined_call_operand.hbm [shape: bf16[128,128], index: 3, kind: input, shape index: {}]   ;;  %s899_s4 = inlined_call_operand.vmem [shape: f32[1,128], index: 4, kind: input, shape index: {}]   ;;  %s900_s5 = inlined_call_operand.hbm [shape: bf16[128,128], index: 5, kind: input, shape index: {}]   ;;  %s901_s6 = inlined_call_operand.vmem [shape: f32[1,128], index: 6, kind: input, shape index: {}]   ;;  %s902_s7 = inlined_call_operand.hbm [shape: f32[16,128], index: 7, kind: output, shape index: {}]  }
   0x1   :  { %13 = vsyncpa [#allocation6], 0 }
   0x2   :  { %14 = vsyncpa [#allocation9], 0 }
   0x3   :  { %15 = vsyncpa [#allocation4], 0  ;;  %s719_s24 = smov [#allocation5]   ;;  %s720_s26 = smov [#allocation2]  }
   0x4   :  { %s33_s25 = sshll.u32 %s719_s24, 4  ;;  %s21_s27 = sshll.u32 %s720_s26, 4  ;;  %s34_s25 = int_to_ptr.vmem [resolvable:$true] %s33_s25  ;;  %s770_s27 = int_to_ptr.vmem [resolvable:$true] %s21_s27 }
   0x5   :  { %s601_s30 = scalar_lea.hbm %s896_s1, 1024 }
   0x6   :  { %p602_p0 = scmp.ne.s32.totalorder %s896_s1, %s601_s30  ;;  %p605_p1 = scmp.lt.u32.totalorder %s601_s30, %s896_s1 }
   0x8   :  { %p607_p2 = pnand %p605_p1, %p602_p0 }
   0xa   :  { %610 = shalt.err (!%p607_p2)
}
   0xb   :  { %s611_s12 = scalar_lea.vmem %s34_s25, 1024  ;;  %p616_p4 = scmp.lt.s32.totalorder %s34_s25, %s34_s25 }
   0xc   :  { %p612_p3 = scmp.ne.s32.totalorder %s34_s25, %s611_s12  ;;  %p617_p5 = scmp.lt.s32.totalorder %s611_s12, %s611_s12 }
   0xe   :  { %p618_p6 = por %p617_p5, %p616_p4 }
  0x10   :  { %p619_p7 = pnand %p618_p6, %p612_p3 }
  0x12   :  { %622 = shalt.err (!%p619_p7)
}
  0x13   :  { %s721_s13 = smov 64   ;;  %s722_s14 = smov 4  }
  0x14   :  { %39 = dma.hbm_to_vmem [thread:$0]  %s896_s1, 1024, %s34_s25, [#allocation6], %s721_s13, %s721_s13, %s722_s14  }
  0x15   :  { %s623_s19 = scalar_lea.hbm %s895_s0, 128 }
  0x16   :  { %p624_p8 = scmp.ne.s32.totalorder %s895_s0, %s623_s19  ;;  %p627_p9 = scmp.lt.u32.totalorder %s623_s19, %s895_s0 }
  0x18   :  { %p629_p10 = pnand %p627_p9, %p624_p8 }
  0x1a   :  { %632 = shalt.err (!%p629_p10)
}
  0x1b   :  { %s633_s24 = scalar_lea.vmem %s770_s27, 128  ;;  %p638_p12 = scmp.lt.s32.totalorder %s770_s27, %s770_s27 }
  0x1c   :  { %p634_p11 = scmp.ne.s32.totalorder %s770_s27, %s633_s24  ;;  %p639_p13 = scmp.lt.s32.totalorder %s633_s24, %s633_s24 }
  0x1e   :  { %p640_p0 = por %p639_p13, %p638_p12 }
  0x20   :  { %p641_p1 = pnand %p640_p0, %p634_p11 }
  0x22   :  { %644 = shalt.err (!%p641_p1)
}
  0x23   :  { %27 = dma.hbm_to_vmem [thread:$0]  %s895_s0, 128, %s770_s27, [#allocation3], %s721_s13, %s721_s13, %s722_s14  }
  0x24   :  { %s723_s26 = smov [#allocation7]   ;;  %s724_s29 = smov [#allocation8]  }
  0x25   :  { %s47_s28 = sshll.u32 %s723_s26, 4  ;;  %s61_s30 = sshll.u32 %s724_s29, 4  ;;  %s48_s28 = int_to_ptr.vmem [resolvable:$true] %s47_s28  ;;  %s807_s30 = int_to_ptr.vmem [resolvable:$true] %s61_s30 }
  0x26   :  { %s645_s10 = scalar_lea.hbm %s898_s3, 1024 }
  0x27   :  { %p646_p2 = scmp.ne.s32.totalorder %s898_s3, %s645_s10  ;;  %p649_p3 = scmp.lt.u32.totalorder %s645_s10, %s898_s3 }
  0x29   :  { %p651_p4 = pnand %p649_p3, %p646_p2 }
  0x2b   :  { %654 = shalt.err (!%p651_p4)
}
  0x2c   :  { %s655_s0 = scalar_lea.vmem %s48_s28, 1024  ;;  %p660_p6 = scmp.lt.s32.totalorder %s48_s28, %s48_s28 }
  0x2d   :  { %p656_p5 = scmp.ne.s32.totalorder %s48_s28, %s655_s0  ;;  %p661_p7 = scmp.lt.s32.totalorder %s655_s0, %s655_s0 }
  0x2f   :  { %p662_p8 = por %p661_p7, %p660_p6 }
  0x31   :  { %p663_p9 = pnand %p662_p8, %p656_p5 }
  0x33   :  { %666 = shalt.err (!%p663_p9)
}
  0x34   :  { %53 = dma.hbm_to_vmem [thread:$0]  %s898_s3, 1024, %s48_s28, [#allocation6], %s721_s13, %s721_s13, %s722_s14  }
  0x35   :  { %s667_s20 = scalar_lea.hbm %s900_s5, 1024 }
  0x36   :  { %p668_p10 = scmp.ne.s32.totalorder %s900_s5, %s667_s20  ;;  %p671_p11 = scmp.lt.u32.totalorder %s667_s20, %s900_s5 }
  0x38   :  { %p673_p12 = pnand %p671_p11, %p668_p10 }
  0x3a   :  { %676 = shalt.err (!%p673_p12)
}
  0x3b   :  { %s677_s1 = scalar_lea.vmem %s807_s30, 1024  ;;  %p682_p0 = scmp.lt.s32.totalorder %s807_s30, %s807_s30 }
  0x3c   :  { %p678_p13 = scmp.ne.s32.totalorder %s807_s30, %s677_s1  ;;  %p683_p1 = scmp.lt.s32.totalorder %s677_s1, %s677_s1 }
  0x3e   :  { %p684_p2 = por %p683_p1, %p682_p0 }
  0x40   :  { %p685_p3 = pnand %p684_p2, %p678_p13 }
  0x42   :  { %688 = shalt.err (!%p685_p3)
}
  0x43   :  { %67 = dma.hbm_to_vmem [thread:$0]  %s900_s5, 1024, %s807_s30, [#allocation9], %s721_s13, %s721_s13, %s722_s14  }
  0x44   :  { %711 = dma.done.wait [#allocation3], 128  }
  0x45   :  { %712 = vsyncadd [#allocation3], 4294967168 }
  0x46   :  { %713 = dma.done.wait [#allocation6], 2048  }
  0x47   :  { %714 = vsyncadd [#allocation6], 4294965248 }
  0x48   :  { %715 = dma.done.wait [#allocation9], 1024  }
  0x49   :  { %716 = vsyncadd [#allocation9], 4294966272  ;;  %v725_v0 = vmov 0.0   ;;  %vm726_vm0 = vmmov 0   ;;  %v576_v1 = vld [vmem:[#allocation5] sm:$0xff]   ;;  %v577_v2 = vld [vmem:[#allocation5 + $0x8] sm:$0xff]  }
  0x4a   :  { %505 = vmatprep.subr.bf16.mxu0 %v725_v0  ;;  %521 = vmatprep.mubr.msk.bf16.mxu0 %vm726_vm0, %v725_v0  ;;  %v578_v3 = vld [vmem:[#allocation5 + $0x10] sm:$0xff]   ;;  %v585_v4 = vld [vmem:[#allocation7] sm:$0xff]   ;;  %v579_v5 = vld [vmem:[#allocation5 + $0x18] sm:$0xff]   ;;  %s727_s29 = smov [#allocation10]  }
  0x4b   :  { %525 = vmatprep.subr.bf16.mxu1 %v725_v0  ;;  %541 = vmatprep.mubr.msk.bf16.mxu1 %vm726_vm0, %v725_v0  ;;  %v586_v6 = vld [vmem:[#allocation7 + $0x8] sm:$0xff]   ;;  %v580_v7 = vld [vmem:[#allocation5 + $0x20] sm:$0xff]   ;;  %v587_v8 = vld [vmem:[#allocation7 + $0x10] sm:$0xff]   ;;  %s436_s30 = sshll.u32 %s727_s29, 4  ;;  %s437_s30 = int_to_ptr.vmem [resolvable:$true] %s436_s30 }
  0x4c   :  { %506 = vmatpush3.bf16.msra.mxu0 %v576_v1  ;;  %526 = vmatpush3.bf16.msra.mxu1 %v585_v4  ;;  %v581_v9 = vld [vmem:[#allocation5 + $0x28] sm:$0xff]   ;;  %v588_v10 = vld [vmem:[#allocation7 + $0x18] sm:$0xff]   ;;  %v582_v11 = vld [vmem:[#allocation5 + $0x30] sm:$0xff]   ;;  %p694_p5 = scmp.lt.s32.totalorder %s437_s30, %s437_s30 }
  0x4d   :  { %507 = vmatprep.subr.bf16.mxu0 %v725_v0  ;;  %527 = vmatprep.subr.bf16.mxu1 %v725_v0  ;;  %v589_v12 = vld [vmem:[#allocation7 + $0x20] sm:$0xff]   ;;  %v583_v13 = vld [vmem:[#allocation5 + $0x38] sm:$0xff]   ;;  %v590_v14 = vld [vmem:[#allocation7 + $0x28] sm:$0xff]  }
  0x4e   :  { %v584_v15 = vld [vmem:[#allocation2] sm:$0xff]   ;;  %v591_v16 = vld [vmem:[#allocation7 + $0x30] sm:$0xff]   ;;  %v593_v18 = vld [vmem:[#allocation8] sm:$0xff]  }
  0x4f   :  { %v592_v17 = vld [vmem:[#allocation7 + $0x38] sm:$0xff]   ;;  %v594_v19 = vld [vmem:[#allocation8 + $0x8] sm:$0xff]   ;;  %v595_v20 = vld [vmem:[#allocation8 + $0x10] sm:$0xff]  }
  0x50   :  { %508 = vmatpush3.bf16.msra.mxu0 %v577_v2  ;;  %528 = vmatpush3.bf16.msra.mxu1 %v586_v6  ;;  %v596_v21 = vld [vmem:[#allocation8 + $0x18] sm:$0xff]   ;;  %v597_v22 = vld [vmem:[#allocation8 + $0x20] sm:$0xff]   ;;  %v598_v23 = vld [vmem:[#allocation8 + $0x28] sm:$0xff]  }
  0x51   :  { %509 = vmatprep.subr.bf16.mxu0 %v725_v0  ;;  %529 = vmatprep.subr.bf16.mxu1 %v725_v0  ;;  %v450_v24 = vld [vmem:[%s897_s2] ss:$0 sm:$0xff]  ;;  %v599_v32 = vld [vmem:[#allocation8 + $0x30] sm:$0xff]  }
  0x52   :  { %v600_v33 = vld [vmem:[#allocation8 + $0x38] sm:$0xff]  }
  0x53   :  { %v460_v34 = vld [vmem:[%s899_s4] ss:$0 sm:$0xff]  ;;  %s689_s4 = scalar_lea.vmem %s437_s30, 256 }
  0x54   :  { %510 = vmatpush3.bf16.msra.mxu0 %v578_v3  ;;  %530 = vmatpush3.bf16.msra.mxu1 %v587_v8  ;;  %v469_v42 = vld [vmem:[%s901_s6] ss:$0 sm:$0xff]  ;;  %p690_p4 = scmp.ne.s32.totalorder %s437_s30, %s689_s4  ;;  %p695_p6 = scmp.lt.s32.totalorder %s689_s4, %s689_s4 }
  0x55   :  { %511 = vmatprep.subr.bf16.mxu0 %v725_v0  ;;  %531 = vmatprep.subr.bf16.mxu1 %v725_v0 }
  0x56   :  { %p696_p7 = por %p695_p6, %p694_p5 }
  0x58   :  { %512 = vmatpush3.bf16.msra.mxu0 %v579_v5  ;;  %532 = vmatpush3.bf16.msra.mxu1 %v588_v10  ;;  %p697_p8 = pnand %p696_p7, %p690_p4 }
  0x59   :  { %513 = vmatprep.subr.bf16.mxu0 %v725_v0  ;;  %533 = vmatprep.subr.bf16.mxu1 %v725_v0 }
  0x5c   :  { %514 = vmatpush3.bf16.msra.mxu0 %v580_v7  ;;  %534 = vmatpush3.bf16.msra.mxu1 %v589_v12 }
  0x5d   :  { %515 = vmatprep.subr.bf16.mxu0 %v725_v0  ;;  %535 = vmatprep.subr.bf16.mxu1 %v725_v0 }
  0x60   :  { %516 = vmatpush3.bf16.msra.mxu0 %v581_v9  ;;  %536 = vmatpush3.bf16.msra.mxu1 %v590_v14 }
  0x61   :  { %517 = vmatprep.subr.bf16.mxu0 %v725_v0  ;;  %537 = vmatprep.subr.bf16.mxu1 %v725_v0 }
  0x64   :  { %518 = vmatpush3.bf16.msra.mxu0 %v582_v11  ;;  %538 = vmatpush3.bf16.msra.mxu1 %v591_v16 }
  0x65   :  { %519 = vmatprep.subr.bf16.mxu0 %v725_v0  ;;  %539 = vmatprep.subr.bf16.mxu1 %v725_v0 }
  0x68   :  { %520 = vmatpush3.bf16.msra.mxu0 %v583_v13  ;;  %540 = vmatpush3.bf16.msra.mxu1 %v592_v17 }
  0x69   :  { %545 = vmatprep.subr.bf16.mxu0 %v725_v0 }
  0x6b   :  { %522 = vmatmul.mubr.bf16.vlgmr.msra.gmra.mrb[0].mxu0 %v584_v15 }
  0x6c   :  { %561 = vmatprep.mubr.msk.bf16.mxu0 %vm726_vm0, %v725_v0  ;;  %546 = vmatpush3.bf16.msra.mxu0 %v593_v18 }
  0x6d   :  { %547 = vmatprep.subr.bf16.mxu0 %v725_v0 }
  0x70   :  { %548 = vmatpush3.bf16.msra.mxu0 %v594_v19 }
  0x71   :  { %549 = vmatprep.subr.bf16.mxu0 %v725_v0 }
  0x74   :  { %550 = vmatpush3.bf16.msra.mxu0 %v595_v20 }
  0x75   :  { %551 = vmatprep.subr.bf16.mxu0 %v725_v0 }
  0x78   :  { %552 = vmatpush3.bf16.msra.mxu0 %v596_v21 }
  0x79   :  { %553 = vmatprep.subr.bf16.mxu0 %v725_v0 }
  0x7c   :  { %554 = vmatpush3.bf16.msra.mxu0 %v597_v22 }
  0x7d   :  { %555 = vmatprep.subr.bf16.mxu0 %v725_v0 }
  0x80   :  { %556 = vmatpush3.bf16.msra.mxu0 %v598_v23 }
  0x81   :  { %557 = vmatprep.subr.bf16.mxu0 %v725_v0 }
  0x84   :  { %558 = vmatpush3.bf16.msra.mxu0 %v599_v32 }
  0x85   :  { %559 = vmatprep.subr.bf16.mxu0 %v725_v0 }
  0x88   :  { %560 = vmatpush3.bf16.msra.mxu0 %v600_v33 }
 0x13e   :  { %v196_v25 = vpop.f32.mrb[0].mxu0 }
 0x13f   :  { %v523_v26 = vpop.f32.mrb[1].mxu0  ;;  %v197_v28 = vadd.f32 %v450_v24, %v196_v25 }
 0x140   :  { %v199_v27 = vpop.f32.mrb[2].mxu0 }
 0x141   :  { %v200_v29 = vadd.f32 %v450_v24, %v199_v27  ;;  %v524_v30 = vpop.f32.mrb[3].mxu0 }
 0x143   :  { %v203_v31 = vpack.c.bf16 %v200_v29, %v197_v28 }
 0x145   :  { %542 = vmatmul.mubr.bf16.vlgmr.msra.gmra.mrb[0].mxu1 %v203_v31 }
 0x218   :  { %v309_v35 = vpop.f32.mrb[0].mxu1 }
 0x219   :  { %v543_v36 = vpop.f32.mrb[1].mxu1  ;;  %v310_v38 = vadd.f32 %v460_v34, %v309_v35 }
 0x21a   :  { %v312_v37 = vpop.f32.mrb[2].mxu1 }
 0x21b   :  { %v313_v39 = vadd.f32 %v460_v34, %v312_v37  ;;  %v544_v40 = vpop.f32.mrb[3].mxu1 }
 0x21d   :  { %v316_v41 = vpack.c.bf16 %v313_v39, %v310_v38 }
 0x21f   :  { %562 = vmatmul.mubr.bf16.vlgmr.msra.gmra.mrb[4].mxu0 %v316_v41 }
 0x2f2   :  { %v422_v43 = vpop.f32.mrb[4].mxu0 }
 0x2f3   :  { %v423_v44 = vadd.f32 %v469_v42, %v422_v43  ;;  %v563_v45 = vpop.f32.mrb[5].mxu0 }
 0x2f4   :  { %v425_v46 = vpop.f32.mrb[6].mxu0 }
 0x2f5   :  { %429 = vst [vmem:[#allocation10] sm:$0xff] %v423_v44  ;;  %v426_v47 = vadd.f32 %v469_v42, %v425_v46  ;;  %v564_v48 = vpop.f32.mrb[7].mxu0 }
 0x2f7   :  { %430 = vst [vmem:[#allocation10 + $0x8] sm:$0xff] %v426_v47 }
 0x2f8   :  { %700 = shalt.err (!%p697_p8)
}
 0x2f9   :  { %s701_s9 = scalar_lea.hbm %s902_s7, 256 }
 0x2fa   :  { %p702_p9 = scmp.ne.s32.totalorder %s902_s7, %s701_s9  ;;  %p705_p10 = scmp.lt.u32.totalorder %s701_s9, %s902_s7 }
 0x2fc   :  { %p707_p11 = pnand %p705_p10, %p702_p9 }
 0x2fe   :  { %710 = shalt.err (!%p707_p11)
}
 0x2ff   :  { %s728_s16 = smov 128   ;;  %s729_s0 = smov 8  }
 0x300   :  { %442 = dma.vmem_to_hbm [thread:$0]  %s437_s30, 256, %s902_s7, [#allocation4], %s728_s16, %s728_s16, %s729_s0  }
 0x301   :  { %717 = dma.done.wait [#allocation4], 256  }
 0x302   :  { %718 = vsyncadd [#allocation4], 4294967040 }
 0x303   :  { %446 = vsyncpa [#allocation3], 1 }
 0x304   :  { %447 = vsyncpa [#allocation6], 1 }
 0x305   :  { %448 = vsyncpa [#allocation9], 1 }
 0x306   :  { %449 = vsyncpa [#allocation4], 1 }

</bundles_post_ra>
